<compile_context>
chip_gen: v6e
topology: v6e:2x2x1
jax: 0.10.0
libtpu: 0.0.40
codegen_flags: <defaults>
</compile_context>

<pallas_src>
import functools

import jax
import jax.numpy as jnp
import numpy as np
from jax import lax
from jax.experimental import pallas as pl
from jax.experimental.pallas import tpu as pltpu

P_DROP = 0.1  # torch.nn.Dropout(0.1); module is in training mode by default


def _sdp_kernel(x1_ref, w1t_ref, x2_ref, w2t_ref, mask_ref, z1_ref, z3_ref):
    """One batch-block per grid step; everything lives in VMEM.

    x1_ref:   (Bblk, S, D_IN1)
    w1t_ref:  (D_IN1, D)        -- linear1.weight, pre-transposed
    x2_ref:   (Bblk, S, D_IN2)
    w2t_ref:  (D_IN2, D)        -- linear2.weight, pre-transposed
    mask_ref: (Bblk, S, S)      -- dropout keep mask, pre-scaled (0 or 1/(1-p))
    z1_ref:   (Bblk, S, S)
    z3_ref:   (Bblk, S, D)
    """
    bblk, s, d_in1 = x1_ref.shape
    d_in2 = x2_ref.shape[-1]
    d = w1t_ref.shape[-1]

    # Fold batch into the matmul M dimension for the two linear layers:
    # (Bblk*S, d_in) @ (d_in, D) fills the MXU rows instead of S=16 of them.
    x1f = x1_ref[...].reshape(bblk * s, d_in1)
    x2f = x2_ref[...].reshape(bblk * s, d_in2)

    y1f = jnp.dot(x1f, w1t_ref[...], preferred_element_type=jnp.float32)
    y2f = jnp.dot(x2f, w2t_ref[...], preferred_element_type=jnp.float32)

    y1 = y1f.reshape(bblk, s, d)
    y2 = y2f.reshape(bblk, s, d)

    # z1[b] = y1[b] @ y2[b]^T : batched dot_general contracting the shared D
    # axis (no explicit transpose / XLU pass).
    z1 = lax.dot_general(
        y1, y2,
        dimension_numbers=(((2,), (2,)), ((0,), (0,))),
        preferred_element_type=jnp.float32,
    )  # (Bblk, S, S)
    z1_ref[...] = z1

    # Dropout: mask already holds 0.0 or 1/(1-p)  -> single VPU multiply.
    z2 = z1 * mask_ref[...]

    # z3[b] = z2[b] @ y1[b]
    z3_ref[...] = lax.dot_general(
        z2, y1,
        dimension_numbers=(((2,), (1,)), ((0,), (0,))),
        preferred_element_type=jnp.float32,
    )  # (Bblk, S, D)


def _pick_bblk(B, S):
    """Largest divisor of B such that Bblk*S reaches ~256 MXU rows (or all of B)."""
    best = 1
    for cand in range(1, B + 1):
        if B % cand:
            continue
        best = cand
        if cand * S >= 256:
            break
    return best


@functools.partial(jax.jit, static_argnames=("p_drop",))
def model_forward(x1, x2, w1, w2, mask_key, p_drop=P_DROP):
    """x1: (B, S, D_IN1) f32, x2: (B, S, D_IN2) f32,
       w1: (D, D_IN1) f32 (linear1.weight), w2: (D, D_IN2) f32 (linear2.weight),
       mask_key: jax PRNG key for the (training-mode) dropout mask."""
    B, S, d_in1 = x1.shape
    d_in2 = x2.shape[-1]
    D = w1.shape[0]

    w1t = w1.T  # (D_IN1, D)
    w2t = w2.T  # (D_IN2, D)

    # Training-mode dropout mask, pre-scaled by 1/(1-p).
    keep = jax.random.bernoulli(mask_key, 1.0 - p_drop, (B, S, S))
    mask = keep.astype(jnp.float32) * (1.0 / (1.0 - p_drop))

    bblk = _pick_bblk(B, S)
    grid = (B // bblk,)

    z1, z3 = pl.pallas_call(
        _sdp_kernel,
        grid=grid,
        in_specs=[
            pl.BlockSpec((bblk, S, d_in1), lambda b: (b, 0, 0)),
            pl.BlockSpec((d_in1, D), lambda b: (0, 0)),
            pl.BlockSpec((bblk, S, d_in2), lambda b: (b, 0, 0)),
            pl.BlockSpec((d_in2, D), lambda b: (0, 0)),
            pl.BlockSpec((bblk, S, S), lambda b: (b, 0, 0)),
        ],
        out_specs=[
            pl.BlockSpec((bblk, S, S), lambda b: (b, 0, 0)),
            pl.BlockSpec((bblk, S, D), lambda b: (b, 0, 0)),
        ],
        out_shape=(
            jax.ShapeDtypeStruct((B, S, S), jnp.float32),
            jax.ShapeDtypeStruct((B, S, D), jnp.float32),
        ),
        compiler_params=pltpu.CompilerParams(
            # Batch-block steps are independent -> shard across TCs on v7x.
            dimension_semantics=("parallel",),
        ),
    )(x1, w1t, x2, w2t, mask)
    return z1, z3


if __name__ == "__main__":
    # Small shapes consistent with the forward pass (see shape TODO above).
    B, S = 8, 16
    D_IN1 = 256   # linear1 input features
    D_IN2 = 128   # linear2 input features
    D = 128       # shared projection width

    key = jax.random.PRNGKey(0)
    k1, k2, k3, k4, k_mask = jax.random.split(key, 5)

    x1 = jax.random.normal(k1, (B, S, D_IN1), dtype=jnp.float32)
    x2 = jax.random.normal(k2, (B, S, D_IN2), dtype=jnp.float32)

    # Deterministic torch-Linear-style init: U(-1/sqrt(fan_in), 1/sqrt(fan_in))
    b1 = 1.0 / np.sqrt(D_IN1)
    b2 = 1.0 / np.sqrt(D_IN2)
    w1 = jax.random.uniform(k3, (D, D_IN1), jnp.float32, minval=-b1, maxval=b1)
    w2 = jax.random.uniform(k4, (D, D_IN2), jnp.float32, minval=-b2, maxval=b2)

    z1, z3 = model_forward(x1, x2, w1, w2, k_mask)
    jax.block_until_ready((z1, z3))

    # Reference in plain JAX (full-precision matmuls to match the kernel's
    # f32 MXU path); the dropout mask is reproducible from the same key.
    hp = jax.lax.Precision.HIGHEST
    y1_ref = jnp.einsum("bsi,di->bsd", x1, w1, precision=hp)
    y2_ref = jnp.einsum("bsi,di->bsd", x2, w2, precision=hp)
    z1_ref = jnp.einsum("bqd,bkd->bqk", y1_ref, y2_ref, precision=hp)
    keep_ref = jax.random.bernoulli(k_mask, 1.0 - P_DROP, (B, S, S))
    mask_ref = keep_ref.astype(jnp.float32) * (1.0 / (1.0 - P_DROP))
    z3_ref = jnp.einsum("bqk,bkd->bqd", z1_ref * mask_ref, y1_ref, precision=hp)

    np.testing.assert_allclose(np.asarray(z1), np.asarray(z1_ref),
                               rtol=5e-3, atol=5e-3)
    np.testing.assert_allclose(np.asarray(z3), np.asarray(z3_ref),
                               rtol=5e-3, atol=5e-3)
    assert z1.shape == (B, S, S) and z3.shape == (B, S, D)
    assert bool(jnp.all(jnp.isfinite(z3)))

    print("KERNEL_OK")
</pallas_src>

<mosaic_0001>
module attributes {stable_mosaic.version = 11 : i64} {
  func.func @_sdp_kernel(%arg0: i32, %arg1: memref<8x16x256xf32, #tpu.memory_space<vmem>>, %arg2: memref<256x128xf32, #tpu.memory_space<vmem>>, %arg3: memref<8x16x128xf32, #tpu.memory_space<vmem>>, %arg4: memref<128x128xf32, #tpu.memory_space<vmem>>, %arg5: memref<8x16x16xf32, #tpu.memory_space<vmem>>, %arg6: memref<8x16x16xf32, #tpu.memory_space<vmem>>, %arg7: memref<8x16x128xf32, #tpu.memory_space<vmem>>) attributes {dimension_semantics = [#tpu.dimension_semantics<parallel>], iteration_bounds = array<i64: 1>, scalar_prefetch = 0 : i64, scratch_operands = 0 : i64, tpu.core_type = #tpu.core_type<tc>, window_params = [{transform_indices = @transform_0, window_bounds = array<i64: 8, 16, 256>}, {pipeline_mode = #tpu.pipeline_mode<synchronous>, transform_indices = @transform_1, window_bounds = array<i64: 256, 128>}, {transform_indices = @transform_2, window_bounds = array<i64: 8, 16, 128>}, {pipeline_mode = #tpu.pipeline_mode<synchronous>, transform_indices = @transform_3, window_bounds = array<i64: 128, 128>}, {transform_indices = @transform_4, window_bounds = array<i64: 8, 16, 16>}, {transform_indices = @transform_5, window_bounds = array<i64: 8, 16, 16>}, {transform_indices = @transform_6, window_bounds = array<i64: 8, 16, 128>}]} {
    %c0 = arith.constant 0 : index
    %c0_0 = arith.constant 0 : index
    %c0_1 = arith.constant 0 : index
    %0 = vector.load %arg1[%c0, %c0_0, %c0_1] : memref<8x16x256xf32, #tpu.memory_space<vmem>>, vector<8x16x256xf32>
    %1 = vector.shape_cast %0 : vector<8x16x256xf32> to vector<128x256xf32>
    %c0_2 = arith.constant 0 : index
    %c0_3 = arith.constant 0 : index
    %c0_4 = arith.constant 0 : index
    %2 = vector.load %arg3[%c0_2, %c0_3, %c0_4] : memref<8x16x128xf32, #tpu.memory_space<vmem>>, vector<8x16x128xf32>
    %3 = vector.shape_cast %2 : vector<8x16x128xf32> to vector<128x128xf32>
    %c0_5 = arith.constant 0 : index
    %c0_6 = arith.constant 0 : index
    %4 = vector.load %arg2[%c0_5, %c0_6] : memref<256x128xf32, #tpu.memory_space<vmem>>, vector<256x128xf32>
    %cst = arith.constant dense<0.000000e+00> : vector<128x128xf32>
    %5 = tpu.matmul %1, %4, %cst {dimension_numbers = #tpu.dot_dimension_numbers<[1], [0], [0], [1], [0, 0, 1, 1], [], []>} : vector<128x256xf32>, vector<256x128xf32>, vector<128x128xf32> -> vector<128x128xf32>
    %c0_7 = arith.constant 0 : index
    %c0_8 = arith.constant 0 : index
    %6 = vector.load %arg4[%c0_7, %c0_8] : memref<128x128xf32, #tpu.memory_space<vmem>>, vector<128x128xf32>
    %cst_9 = arith.constant dense<0.000000e+00> : vector<128x128xf32>
    %7 = tpu.matmul %3, %6, %cst_9 {dimension_numbers = #tpu.dot_dimension_numbers<[1], [0], [0], [1], [0, 0, 1, 1], [], []>} : vector<128x128xf32>, vector<128x128xf32>, vector<128x128xf32> -> vector<128x128xf32>
    %8 = vector.shape_cast %5 : vector<128x128xf32> to vector<8x16x128xf32>
    %9 = vector.shape_cast %7 : vector<128x128xf32> to vector<8x16x128xf32>
    %cst_10 = arith.constant dense<0.000000e+00> : vector<8x16x16xf32>
    %10 = tpu.matmul %8, %9, %cst_10 {dimension_numbers = #tpu.dot_dimension_numbers<[2], [2], [1], [1], [0, 0, 0, 1, 1, 1], [0], [0]>} : vector<8x16x128xf32>, vector<8x16x128xf32>, vector<8x16x16xf32> -> vector<8x16x16xf32>
    %c0_11 = arith.constant 0 : index
    %c0_12 = arith.constant 0 : index
    %c0_13 = arith.constant 0 : index
    %11 = vector.load %arg6[%c0_11, %c0_12, %c0_13] : memref<8x16x16xf32, #tpu.memory_space<vmem>>, vector<8x16x16xf32>
    tpu.vector_store %arg6[%c0_11, %c0_12, %c0_13], %10 {strides = array<i32>} : memref<8x16x16xf32, #tpu.memory_space<vmem>>, vector<8x16x16xf32>,
    %c0_14 = arith.constant 0 : index
    %c0_15 = arith.constant 0 : index
    %c0_16 = arith.constant 0 : index
    %12 = vector.load %arg5[%c0_14, %c0_15, %c0_16] : memref<8x16x16xf32, #tpu.memory_space<vmem>>, vector<8x16x16xf32>
    %13 = arith.mulf %10, %12 : vector<8x16x16xf32>
    %cst_17 = arith.constant dense<0.000000e+00> : vector<8x16x128xf32>
    %14 = tpu.matmul %13, %8, %cst_17 {dimension_numbers = #tpu.dot_dimension_numbers<[2], [1], [1], [2], [0, 0, 0, 1, 1, 2], [0], [0]>} : vector<8x16x16xf32>, vector<8x16x128xf32>, vector<8x16x128xf32> -> vector<8x16x128xf32>
    %c0_18 = arith.constant 0 : index
    %c0_19 = arith.constant 0 : index
    %c0_20 = arith.constant 0 : index
    %15 = vector.load %arg7[%c0_18, %c0_19, %c0_20] : memref<8x16x128xf32, #tpu.memory_space<vmem>>, vector<8x16x128xf32>
    tpu.vector_store %arg7[%c0_18, %c0_19, %c0_20], %14 {strides = array<i32>} : memref<8x16x128xf32, #tpu.memory_space<vmem>>, vector<8x16x128xf32>,
    return
  }
  func.func @transform_0(%arg0: i32) -> (i32, i32, i32) {
    %c0_i32 = arith.constant 0 : i32
    %c0_i32_0 = arith.constant 0 : i32
    %c0_i32_1 = arith.constant 0 : i32
    return %arg0, %c0_i32, %c0_i32_0 : i32, i32, i32
  }
  func.func @transform_1(%arg0: i32) -> (i32, i32) {
    %c0_i32 = arith.constant 0 : i32
    %c0_i32_0 = arith.constant 0 : i32
    %c0_i32_1 = arith.constant 0 : i32
    return %c0_i32, %c0_i32_0 : i32, i32
  }
  func.func @transform_2(%arg0: i32) -> (i32, i32, i32) {
    %c0_i32 = arith.constant 0 : i32
    %c0_i32_0 = arith.constant 0 : i32
    %c0_i32_1 = arith.constant 0 : i32
    return %arg0, %c0_i32, %c0_i32_0 : i32, i32, i32
  }
  func.func @transform_3(%arg0: i32) -> (i32, i32) {
    %c0_i32 = arith.constant 0 : i32
    %c0_i32_0 = arith.constant 0 : i32
    %c0_i32_1 = arith.constant 0 : i32
    return %c0_i32, %c0_i32_0 : i32, i32
  }
  func.func @transform_4(%arg0: i32) -> (i32, i32, i32) {
    %c0_i32 = arith.constant 0 : i32
    %c0_i32_0 = arith.constant 0 : i32
    %c0_i32_1 = arith.constant 0 : i32
    return %arg0, %c0_i32, %c0_i32_0 : i32, i32, i32
  }
  func.func @transform_5(%arg0: i32) -> (i32, i32, i32) {
    %c0_i32 = arith.constant 0 : i32
    %c0_i32_0 = arith.constant 0 : i32
    %c0_i32_1 = arith.constant 0 : i32
    return %arg0, %c0_i32, %c0_i32_0 : i32, i32, i32
  }
  func.func @transform_6(%arg0: i32) -> (i32, i32, i32) {
    %c0_i32 = arith.constant 0 : i32
    %c0_i32_0 = arith.constant 0 : i32
    %c0_i32_1 = arith.constant 0 : i32
    return %arg0, %c0_i32, %c0_i32_0 : i32, i32, i32
  }
}

</mosaic_0001>

<bundles_post_ra>
// kernel: model_forward.1
= control target key start
LH: loop header
LB: loop body
LE: loop exit
PB: predicated region body
PF: predicated region fallthrough
CT: control target
= control target key end

     0   :  { %12 = vsyncpa [#allocation3], 0  ;;  %s2662_s0 = inlined_call_operand.vmem [shape: f32[8,16,256], index: 0, kind: input, shape index: {}]   ;;  %s2663_s1 = inlined_call_operand.vmem [shape: f32[256,128], index: 1, kind: input, shape index: {}]   ;;  %s2664_s2 = inlined_call_operand.vmem [shape: f32[8,16,128], index: 2, kind: input, shape index: {}]   ;;  %s2665_s3 = inlined_call_operand.vmem [shape: f32[128,128], index: 3, kind: input, shape index: {}]   ;;  %s2666_s4 = inlined_call_operand.vmem [shape: f32[8,16,16], index: 4, kind: input, shape index: {}]   ;;  %s2667_s5 = inlined_call_operand.hbm [shape: f32[8,16,16], index: 5, kind: output, shape index: {0}]   ;;  %s2668_s6 = inlined_call_operand.hbm [shape: f32[8,16,128], index: 6, kind: output, shape index: {1}]  }
   0x1   :  { %v103_v0 = vld [vmem:[%s2663_s1 + $0xf8] sm:$0xff]  ;;  %v102_v3 = vld [vmem:[%s2663_s1 + $0xf0] sm:$0xff]  ;;  %v101_v6 = vld [vmem:[%s2663_s1 + $0xe8] sm:$0xff] }
   0x2   :  { %v264_v1 = vld [vmem:[%s2665_s3 + $0x78] sm:$0xff]  ;;  %1771 = vmatprep.subr.mxu0 %v103_v0  ;;  %v263_v4 = vld [vmem:[%s2665_s3 + $0x70] sm:$0xff]  ;;  %v262_v7 = vld [vmem:[%s2665_s3 + $0x68] sm:$0xff] }
   0x3   :  { %v87_v2 = vld [vmem:[%s2663_s1 + $0x78] sm:$0xff]  ;;  %1947 = vmatprep.subr.mxu1 %v264_v1  ;;  %v86_v5 = vld [vmem:[%s2663_s1 + $0x70] sm:$0xff]  ;;  %v85_v8 = vld [vmem:[%s2663_s1 + $0x68] sm:$0xff] }
   0x4   :  { %1772 = vmatpush3.msra.mxu0 %v87_v2  ;;  %1948 = vmatpush3.msra.mxu1 %v264_v1  ;;  %v100_v9 = vld [vmem:[%s2663_s1 + $0xe0] sm:$0xff]  ;;  %v99_v12 = vld [vmem:[%s2663_s1 + $0xd8] sm:$0xff]  ;;  %v98_v15 = vld [vmem:[%s2663_s1 + $0xd0] sm:$0xff] }
   0x5   :  { %1773 = vmatprep.subr.mxu0 %v102_v3  ;;  %1949 = vmatprep.subr.mxu1 %v263_v4  ;;  %v261_v10 = vld [vmem:[%s2665_s3 + $0x60] sm:$0xff]  ;;  %v260_v13 = vld [vmem:[%s2665_s3 + $0x58] sm:$0xff]  ;;  %v259_v16 = vld [vmem:[%s2665_s3 + $0x50] sm:$0xff] }
   0x6   :  { %1774 = vmatpush3.msra.mxu0 %v86_v5  ;;  %1950 = vmatpush3.msra.mxu1 %v263_v4  ;;  %v84_v11 = vld [vmem:[%s2663_s1 + $0x60] sm:$0xff]  ;;  %v83_v14 = vld [vmem:[%s2663_s1 + $0x58] sm:$0xff]  ;;  %v82_v17 = vld [vmem:[%s2663_s1 + $0x50] sm:$0xff] }
   0x7   :  { %1775 = vmatprep.subr.mxu0 %v101_v6  ;;  %1951 = vmatprep.subr.mxu1 %v262_v7  ;;  %v97_v18 = vld [vmem:[%s2663_s1 + $0xc8] sm:$0xff]  ;;  %v96_v21 = vld [vmem:[%s2663_s1 + $0xc0] sm:$0xff]  ;;  %v95_v24 = vld [vmem:[%s2663_s1 + $0xb8] sm:$0xff] }
   0x8   :  { %1776 = vmatpush3.msra.mxu0 %v85_v8  ;;  %1952 = vmatpush3.msra.mxu1 %v262_v7  ;;  %v258_v19 = vld [vmem:[%s2665_s3 + $0x48] sm:$0xff]  ;;  %v257_v22 = vld [vmem:[%s2665_s3 + $0x40] sm:$0xff]  ;;  %v256_v25 = vld [vmem:[%s2665_s3 + $0x38] sm:$0xff] }
   0x9   :  { %1777 = vmatprep.subr.mxu0 %v100_v9  ;;  %1953 = vmatprep.subr.mxu1 %v261_v10  ;;  %v81_v20 = vld [vmem:[%s2663_s1 + $0x48] sm:$0xff]  ;;  %v80_v23 = vld [vmem:[%s2663_s1 + $0x40] sm:$0xff]  ;;  %v79_v26 = vld [vmem:[%s2663_s1 + $0x38] sm:$0xff] }
   0xa   :  { %1778 = vmatpush3.msra.mxu0 %v84_v11  ;;  %1954 = vmatpush3.msra.mxu1 %v261_v10  ;;  %v94_v27 = vld [vmem:[%s2663_s1 + $0xb0] sm:$0xff]  ;;  %v93_v30 = vld [vmem:[%s2663_s1 + $0xa8] sm:$0xff]  ;;  %v92_v33 = vld [vmem:[%s2663_s1 + $0xa0] sm:$0xff] }
   0xb   :  { %1779 = vmatprep.subr.mxu0 %v99_v12  ;;  %1955 = vmatprep.subr.mxu1 %v260_v13  ;;  %v255_v28 = vld [vmem:[%s2665_s3 + $0x30] sm:$0xff]  ;;  %v254_v31 = vld [vmem:[%s2665_s3 + $0x28] sm:$0xff]  ;;  %v253_v34 = vld [vmem:[%s2665_s3 + $0x20] sm:$0xff] }
   0xc   :  { %1780 = vmatpush3.msra.mxu0 %v83_v14  ;;  %1956 = vmatpush3.msra.mxu1 %v260_v13  ;;  %v78_v29 = vld [vmem:[%s2663_s1 + $0x30] sm:$0xff]  ;;  %v77_v32 = vld [vmem:[%s2663_s1 + $0x28] sm:$0xff]  ;;  %v76_v35 = vld [vmem:[%s2663_s1 + $0x20] sm:$0xff] }
   0xd   :  { %1781 = vmatprep.subr.mxu0 %v98_v15  ;;  %1957 = vmatprep.subr.mxu1 %v259_v16  ;;  %v91_v36 = vld [vmem:[%s2663_s1 + $0x98] sm:$0xff]  ;;  %v90_v39 = vld [vmem:[%s2663_s1 + $0x90] sm:$0xff]  ;;  %v89_v42 = vld [vmem:[%s2663_s1 + $0x88] sm:$0xff] }
   0xe   :  { %1782 = vmatpush3.msra.mxu0 %v82_v17  ;;  %1958 = vmatpush3.msra.mxu1 %v259_v16  ;;  %v252_v37 = vld [vmem:[%s2665_s3 + $0x18] sm:$0xff]  ;;  %v251_v40 = vld [vmem:[%s2665_s3 + $0x10] sm:$0xff]  ;;  %v250_v43 = vld [vmem:[%s2665_s3 + $0x8] sm:$0xff] }
   0xf   :  { %1783 = vmatprep.subr.mxu0 %v97_v18  ;;  %1959 = vmatprep.subr.mxu1 %v258_v19  ;;  %v75_v38 = vld [vmem:[%s2663_s1 + $0x18] sm:$0xff]  ;;  %v74_v41 = vld [vmem:[%s2663_s1 + $0x10] sm:$0xff]  ;;  %v73_v44 = vld [vmem:[%s2663_s1 + $0x8] sm:$0xff] }
  0x10   :  { %1784 = vmatpush3.msra.mxu0 %v81_v20  ;;  %1960 = vmatpush3.msra.mxu1 %v258_v19  ;;  %v88_v45 = vld [vmem:[%s2663_s1 + $0x80] sm:$0xff]  ;;  %v25_v48 = vld [vmem:[%s2662_s0 + $0x8] sm:$0xff]  ;;  %v27_v52 = vld [vmem:[%s2662_s0 + $0x18] sm:$0xff] }
  0x11   :  { %1785 = vmatprep.subr.mxu0 %v96_v21  ;;  %1961 = vmatprep.subr.mxu1 %v257_v22  ;;  %v249_v46 = vld [vmem:[%s2665_s3] sm:$0xff]  ;;  %v57_v51 = vld [vmem:[%s2664_s2 + $0x8] sm:$0xff]  ;;  %v58_v53 = vld [vmem:[%s2664_s2 + $0x10] sm:$0xff] }
  0x12   :  { %1786 = vmatpush3.msra.mxu0 %v80_v23  ;;  %1962 = vmatpush3.msra.mxu1 %v257_v22  ;;  %v72_v47 = vld [vmem:[%s2663_s1] sm:$0xff] }
  0x13   :  { %1787 = vmatprep.subr.mxu0 %v95_v24  ;;  %1963 = vmatprep.subr.mxu1 %v256_v25  ;;  %v56_v49 = vld [vmem:[%s2664_s2] sm:$0xff] }
  0x14   :  { %1788 = vmatpush3.msra.mxu0 %v79_v26  ;;  %1964 = vmatpush3.msra.mxu1 %v256_v25  ;;  %v24_v50 = vld [vmem:[%s2662_s0] sm:$0xff] }
  0x15   :  { %1789 = vmatprep.subr.mxu0 %v94_v27  ;;  %1965 = vmatprep.subr.mxu1 %v255_v28 }
  0x16   :  { %1790 = vmatpush3.msra.mxu0 %v78_v29  ;;  %1966 = vmatpush3.msra.mxu1 %v255_v28 }
  0x17   :  { %1791 = vmatprep.subr.mxu0 %v93_v30  ;;  %1967 = vmatprep.subr.mxu1 %v254_v31 }
  0x18   :  { %1792 = vmatpush3.msra.mxu0 %v77_v32  ;;  %1968 = vmatpush3.msra.mxu1 %v254_v31 }
  0x19   :  { %1793 = vmatprep.subr.mxu0 %v92_v33  ;;  %1969 = vmatprep.subr.mxu1 %v253_v34 }
  0x1a   :  { %1794 = vmatpush3.msra.mxu0 %v76_v35  ;;  %1970 = vmatpush3.msra.mxu1 %v253_v34 }
  0x1b   :  { %1795 = vmatprep.subr.mxu0 %v91_v36  ;;  %1971 = vmatprep.subr.mxu1 %v252_v37 }
  0x1c   :  { %1796 = vmatpush3.msra.mxu0 %v75_v38  ;;  %1972 = vmatpush3.msra.mxu1 %v252_v37 }
  0x1d   :  { %1797 = vmatprep.subr.mxu0 %v90_v39  ;;  %1973 = vmatprep.subr.mxu1 %v251_v40 }
  0x1e   :  { %1798 = vmatpush3.msra.mxu0 %v74_v41  ;;  %1974 = vmatpush3.msra.mxu1 %v251_v40 }
  0x1f   :  { %1799 = vmatprep.subr.mxu0 %v89_v42  ;;  %1975 = vmatprep.subr.mxu1 %v250_v43 }
  0x20   :  { %1800 = vmatpush3.msra.mxu0 %v73_v44  ;;  %1976 = vmatpush3.msra.mxu1 %v250_v43 }
  0x21   :  { %1801 = vmatprep.subr.mxu0 %v88_v45  ;;  %1977 = vmatprep.subr.mxu1 %v249_v46 }
  0x22   :  { %1802 = vmatpush3.msra.mxu0 %v72_v47  ;;  %168 = vmatprep.mubr.f32.mxu0 %v25_v48 }
  0x23   :  { %13 = vsyncpa [#allocation5], 0  ;;  %1978 = vmatpush3.msra.mxu1 %v249_v46  ;;  %1979 = vmatprep.mubr.f32.mxu1 %v56_v49  ;;  %v26_v54 = vld [vmem:[%s2662_s0 + $0x10] sm:$0xff]  ;;  %v59_v55 = vld [vmem:[%s2664_s2 + $0x18] sm:$0xff]  ;;  %vm1010_vm0 = vcmask 130048  }
  0x24   :  { %169 = vmatmul.mubr.f32.vlgmr.msra.gmra.mxu0 %v24_v50  ;;  %1980 = vmatmul.mubr.f32.vlgmr.msra.gmra.mxu1 %v57_v51  ;;  %v29_v56 = vld [vmem:[%s2662_s0 + $0x28] sm:$0xff]  ;;  %v60_v57 = vld [vmem:[%s2664_s2 + $0x20] sm:$0xff]  ;;  %v31_v60 = vld [vmem:[%s2662_s0 + $0x38] sm:$0xff] }
  0x25   :  { %173 = vmatprep.mubr.f32.mxu0 %v27_v52  ;;  %1982 = vmatprep.mubr.f32.mxu1 %v58_v53  ;;  %v28_v58 = vld [vmem:[%s2662_s0 + $0x20] sm:$0xff]  ;;  %v61_v59 = vld [vmem:[%s2664_s2 + $0x28] sm:$0xff]  ;;  %v62_v61 = vld [vmem:[%s2664_s2 + $0x30] sm:$0xff] }
  0x26   :  { %v30_v62 = vld [vmem:[%s2662_s0 + $0x30] sm:$0xff]  ;;  %v63_v63 = vld [vmem:[%s2664_s2 + $0x38] sm:$0xff]  ;;  %v33_v0 = vld [vmem:[%s2662_s0 + $0x48] sm:$0xff] }
  0x27   :  { %v64_v1 = vld [vmem:[%s2664_s2 + $0x40] sm:$0xff]  ;;  %v65_v3 = vld [vmem:[%s2664_s2 + $0x48] sm:$0xff]  ;;  %v35_v4 = vld [vmem:[%s2662_s0 + $0x58] sm:$0xff] }
  0x28   :  { %174 = vmatmul.mubr.f32.gmra.mxu0 %v26_v54  ;;  %1983 = vmatmul.mubr.f32.gmra.mxu1 %v59_v55  ;;  %v32_v2 = vld [vmem:[%s2662_s0 + $0x40] sm:$0xff]  ;;  %v66_v5 = vld [vmem:[%s2664_s2 + $0x50] sm:$0xff]  ;;  %v67_v7 = vld [vmem:[%s2664_s2 + $0x58] sm:$0xff] }
  0x29   :  { %178 = vmatprep.mubr.f32.mxu0 %v29_v56  ;;  %1985 = vmatprep.mubr.f32.mxu1 %v60_v57  ;;  %v34_v6 = vld [vmem:[%s2662_s0 + $0x50] sm:$0xff]  ;;  %v37_v8 = vld [vmem:[%s2662_s0 + $0x68] sm:$0xff]  ;;  %v68_v9 = vld [vmem:[%s2664_s2 + $0x60] sm:$0xff] }
  0x2a   :  { %v36_v10 = vld [vmem:[%s2662_s0 + $0x60] sm:$0xff]  ;;  %v69_v11 = vld [vmem:[%s2664_s2 + $0x68] sm:$0xff]  ;;  %v39_v12 = vld [vmem:[%s2662_s0 + $0x78] sm:$0xff] }
  0x2b   :  { %v70_v13 = vld [vmem:[%s2664_s2 + $0x70] sm:$0xff]  ;;  %v71_v15 = vld [vmem:[%s2664_s2 + $0x78] sm:$0xff]  ;;  %v41_v16 = vld [vmem:[%s2662_s0 + $0x88] sm:$0xff]  ;;  %s2163_s2 = smov [#allocation2]  }
  0x2c   :  { %179 = vmatmul.mubr.f32.gmra.mxu0 %v28_v58  ;;  %1986 = vmatmul.mubr.f32.gmra.mxu1 %v61_v59  ;;  %v38_v14 = vld [vmem:[%s2662_s0 + $0x70] sm:$0xff]  ;;  %v40_v17 = vld [vmem:[%s2662_s0 + $0x80] sm:$0xff]  ;;  %v43_v18 = vld [vmem:[%s2662_s0 + $0x98] sm:$0xff]  ;;  %s1728_s15 = sshll.u32 %s2163_s2, 4  ;;  %s1729_s15 = int_to_ptr.vmem [resolvable:$true] %s1728_s15 }
  0x2d   :  { %183 = vmatprep.mubr.f32.mxu0 %v31_v60  ;;  %1988 = vmatprep.mubr.f32.mxu1 %v62_v61  ;;  %v42_v19 = vld [vmem:[%s2662_s0 + $0x90] sm:$0xff]  ;;  %v45_v20 = vld [vmem:[%s2662_s0 + $0xa8] sm:$0xff]  ;;  %v44_v21 = vld [vmem:[%s2662_s0 + $0xa0] sm:$0xff]  ;;  %s2119_s16 = scalar_lea.vmem %s1729_s15, 2048  ;;  %p2124_p1 = scmp.lt.s32.totalorder %s1729_s15, %s1729_s15 }
  0x2e   :  { %v47_v22 = vld [vmem:[%s2662_s0 + $0xb8] sm:$0xff]  ;;  %v46_v23 = vld [vmem:[%s2662_s0 + $0xb0] sm:$0xff]  ;;  %v49_v24 = vld [vmem:[%s2662_s0 + $0xc8] sm:$0xff]  ;;  %p2120_p0 = scmp.ne.s32.totalorder %s1729_s15, %s2119_s16  ;;  %p2125_p2 = scmp.lt.s32.totalorder %s2119_s16, %s2119_s16 }
  0x2f   :  { %v48_v25 = vld [vmem:[%s2662_s0 + $0xc0] sm:$0xff]  ;;  %v51_v26 = vld [vmem:[%s2662_s0 + $0xd8] sm:$0xff]  ;;  %v50_v27 = vld [vmem:[%s2662_s0 + $0xd0] sm:$0xff] }
  0x30   :  { %184 = vmatmul.mubr.f32.gmra.mxu0 %v30_v62  ;;  %1989 = vmatmul.mubr.f32.gmra.mxu1 %v63_v63  ;;  %v53_v28 = vld [vmem:[%s2662_s0 + $0xe8] sm:$0xff]  ;;  %v52_v29 = vld [vmem:[%s2662_s0 + $0xe0] sm:$0xff]  ;;  %v55_v30 = vld [vmem:[%s2662_s0 + $0xf8] sm:$0xff]  ;;  %p2126_p3 = por %p2125_p2, %p2124_p1 }
  0x31   :  { %188 = vmatprep.mubr.f32.mxu0 %v33_v0  ;;  %1991 = vmatprep.mubr.f32.mxu1 %v64_v1  ;;  %v54_v31 = vld [vmem:[%s2662_s0 + $0xf0] sm:$0xff] }
  0x32   :  { %p2127_p4 = pnand %p2126_p3, %p2120_p0 }
  0x34   :  { %189 = vmatmul.mubr.f32.gmra.mxu0 %v32_v2  ;;  %1992 = vmatmul.mubr.f32.gmra.mxu1 %v65_v3 }
  0x35   :  { %193 = vmatprep.mubr.f32.mxu0 %v35_v4  ;;  %1994 = vmatprep.mubr.f32.mxu1 %v66_v5 }
  0x38   :  { %194 = vmatmul.mubr.f32.gmra.mxu0 %v34_v6  ;;  %1995 = vmatmul.mubr.f32.gmra.mxu1 %v67_v7 }
  0x39   :  { %198 = vmatprep.mubr.f32.mxu0 %v37_v8  ;;  %1997 = vmatprep.mubr.f32.mxu1 %v68_v9 }
  0x3c   :  { %199 = vmatmul.mubr.f32.gmra.mxu0 %v36_v10  ;;  %1998 = vmatmul.mubr.f32.gmra.mxu1 %v69_v11 }
  0x3d   :  { %203 = vmatprep.mubr.f32.mxu0 %v39_v12  ;;  %2000 = vmatprep.mubr.f32.mxu1 %v70_v13 }
  0x40   :  { %204 = vmatmul.mubr.f32.gmra.mxu0 %v38_v14  ;;  %2001 = vmatmul.mubr.f32.gmra.mxu1 %v71_v15 }
  0x41   :  { %208 = vmatprep.mubr.f32.mxu0 %v41_v16 }
  0x44   :  { %209 = vmatmul.mubr.f32.gmra.mxu0 %v40_v17 }
  0x45   :  { %213 = vmatprep.mubr.f32.mxu0 %v43_v18 }
  0x48   :  { %214 = vmatmul.mubr.f32.gmra.mxu0 %v42_v19 }
  0x49   :  { %218 = vmatprep.mubr.f32.mxu0 %v45_v20 }
  0x4c   :  { %219 = vmatmul.mubr.f32.gmra.mxu0 %v44_v21 }
  0x4d   :  { %223 = vmatprep.mubr.f32.mxu0 %v47_v22 }
  0x50   :  { %224 = vmatmul.mubr.f32.gmra.mxu0 %v46_v23 }
  0x51   :  { %228 = vmatprep.mubr.f32.mxu0 %v49_v24 }
  0x54   :  { %229 = vmatmul.mubr.f32.gmra.mxu0 %v48_v25 }
  0x55   :  { %233 = vmatprep.mubr.f32.mxu0 %v51_v26 }
  0x58   :  { %234 = vmatmul.mubr.f32.gmra.mxu0 %v50_v27 }
  0x59   :  { %238 = vmatprep.mubr.f32.mxu0 %v53_v28 }
  0x5c   :  { %239 = vmatmul.mubr.f32.gmra.mxu0 %v52_v29 }
  0x5d   :  { %243 = vmatprep.mubr.f32.mxu0 %v55_v30 }
  0x60   :  { %244 = vmatmul.mubr.f32.gmra.mxu0 %v54_v31 }
  0xe4   :  { %v1803_v32 = vpop.f32.mrf.mxu0  ;;  %v1981_v33 = vpop.f32.mrf.mxu1 }
  0xe5   :  { %2003 = vmatprep.subr.mxu1 %v1981_v33 }
  0xe6   :  { %v1804_v34 = vpop.f32.mrf.mxu0  ;;  %v331_v35 = vpop.f32.mrf.mxu1  ;;  %2004 = vmatpush3.xpose.msra.mxu1 %v1981_v33  ;;  %v1027_v33 = vld [vmem:[%s2666_s4] sm:$0xff] }
  0xe7   :  { %v2490_v36 = vadd.f32 %v1804_v34, %v1803_v32  ;;  %2005 = vmatprep.subr.mxu1 %v331_v35  ;;  %v1028_v34 = vld [vmem:[%s2666_s4 + $0x8] sm:$0xff] }
  0xe8   :  { %v1806_v37 = vpop.f32.mrf.mxu0  ;;  %v1984_v38 = vpop.f32.mrf.mxu1 }
  0xe9   :  { %2007 = vmatprep.mubr.f32.mxu1 %v2490_v36 }
  0xea   :  { %v1807_v39 = vpop.f32.mrf.mxu0  ;;  %v341_v40 = vpop.f32.mrf.mxu1  ;;  %2006 = vmatpush3.xpose.msra.mxu1 %v331_v35 }
  0xeb   :  { %v2493_v41 = vadd.f32 %v1807_v39, %v1806_v37  ;;  %2010 = vmatprep.subr.mxu1 %v1984_v38  ;;  %v1029_v39 = vld [vmem:[%s2666_s4 + $0x10] sm:$0xff] }
  0xec   :  { %v1809_v42 = vpop.f32.mrf.mxu0  ;;  %v1987_v43 = vpop.f32.mrf.mxu1 }
  0xed   :  { %2008 = vmatmul.mubr.f32.vlgmr.msra.gmra.mxu1 %v2493_v41 }
  0xee   :  { %v1810_v44 = vpop.f32.mrf.mxu0  ;;  %v351_v45 = vpop.f32.mrf.mxu1  ;;  %2011 = vmatpush3.xpose.msra.mxu1 %v1984_v38 }
  0xef   :  { %v2496_v46 = vadd.f32 %v1810_v44, %v1809_v42  ;;  %2012 = vmatprep.subr.mxu1 %v341_v40 }
  0xf0   :  { %v1812_v47 = vpop.f32.mrf.mxu0  ;;  %v1990_v48 = vpop.f32.mrf.mxu1 }
  0xf1   :  { %2014 = vmatprep.mubr.f32.mxu1 %v2496_v46 }
  0xf2   :  { %v1813_v49 = vpop.f32.mrf.mxu0  ;;  %v361_v50 = vpop.f32.mrf.mxu1  ;;  %2013 = vmatpush3.xpose.msra.mxu1 %v341_v40  ;;  %v1030_v40 = vld [vmem:[%s2666_s4 + $0x18] sm:$0xff] }
  0xf3   :  { %v2499_v51 = vadd.f32 %v1813_v49, %v1812_v47  ;;  %2017 = vmatprep.subr.mxu1 %v1987_v43 }
  0xf4   :  { %v1815_v52 = vpop.f32.mrf.mxu0  ;;  %v1993_v53 = vpop.f32.mrf.mxu1 }
  0xf5   :  { %2015 = vmatmul.mubr.f32.vlgmr.msra.gmra.mxu1 %v2499_v51  ;;  %2031 = vmatprep.subr.mxu0 %v1993_v53 }
  0xf6   :  { %v1816_v54 = vpop.f32.mrf.mxu0  ;;  %v371_v55 = vpop.f32.mrf.mxu1  ;;  %2018 = vmatpush3.xpose.msra.mxu1 %v1987_v43  ;;  %2032 = vmatpush3.xpose.msra.mxu0 %v1993_v53 }
  0xf7   :  { %v2502_v56 = vadd.f32 %v1816_v54, %v1815_v52  ;;  %2019 = vmatprep.subr.mxu1 %v351_v45  ;;  %2033 = vmatprep.subr.mxu0 %v371_v55  ;;  %v1034_v52 = vld [vmem:[%s2666_s4 + $0x38] sm:$0xff] }
  0xf8   :  { %v1818_v57 = vpop.f32.mrf.mxu0  ;;  %v1996_v58 = vpop.f32.mrf.mxu1 }
  0xf9   :  { %2021 = vmatprep.mubr.f32.mxu1 %v2502_v56 }
  0xfa   :  { %v1819_v59 = vpop.f32.mrf.mxu0  ;;  %2020 = vmatpush3.xpose.msra.mxu1 %v351_v45  ;;  %2034 = vmatpush3.xpose.msra.mxu0 %v371_v55  ;;  %v381_v60 = vpop.f32.mrf.mxu1  ;;  %v1031_v45 = vld [vmem:[%s2666_s4 + $0x20] sm:$0xff] }
  0xfb   :  { %v2505_v61 = vadd.f32 %v1819_v59, %v1818_v57  ;;  %2024 = vmatprep.subr.mxu1 %v1990_v48  ;;  %v1035_v57 = vld [vmem:[%s2666_s4 + $0x40] sm:$0xff] }
  0xfc   :  { %v1821_v62 = vpop.f32.mrf.mxu0  ;;  %v1999_v63 = vpop.f32.mrf.mxu1 }
  0xfd   :  { %2022 = vmatmul.mubr.f32.vlgmr.msra.gmra.mxu1 %v2505_v61  ;;  %2045 = vmatprep.subr.mxu0 %v1999_v63 }
  0xfe   :  { %v1822_v0 = vpop.f32.mrf.mxu0  ;;  %2025 = vmatpush3.xpose.msra.mxu1 %v1990_v48  ;;  %v391_v7 = vpop.f32.mrf.mxu1 }
  0xff   :  { %v2508_v1 = vadd.f32 %v1822_v0, %v1821_v62  ;;  %2026 = vmatprep.subr.mxu1 %v361_v50  ;;  %v1038_v0 = vld [vmem:[%s2666_s4 + $0x58] sm:$0xff] }
 0x100   :  { %v1824_v2 = vpop.f32.mrf.mxu0  ;;  %v2002_v10 = vpop.f32.mrf.mxu1 }
 0x101   :  { %2028 = vmatprep.mubr.f32.mxu1 %v2508_v1 }
 0x102   :  { %v1825_v3 = vpop.f32.mrf.mxu0  ;;  %2027 = vmatpush3.xpose.msra.mxu1 %v361_v50  ;;  %v401_v20 = vpop.f32.mrf.mxu1 }
 0x103   :  { %v2511_v4 = vadd.f32 %v1825_v3, %v1824_v2  ;;  %2038 = vmatprep.subr.mxu1 %v1996_v58 }
 0x104   :  { %v1827_v5 = vpop.f32.mrf.mxu0 }
 0x105   :  { %2029 = vmatmul.mubr.f32.vlgmr.msra.gmra.mxu1 %v2511_v4 }
 0x106   :  { %v1828_v6 = vpop.f32.mrf.mxu0  ;;  %2039 = vmatpush3.xpose.msra.mxu1 %v1996_v58  ;;  %v1036_v58 = vld [vmem:[%s2666_s4 + $0x48] sm:$0xff] }
 0x107   :  { %v2514_v8 = vadd.f32 %v1828_v6, %v1827_v5  ;;  %2040 = vmatprep.subr.mxu1 %v381_v60  ;;  %v1039_v5 = vld [vmem:[%s2666_s4 + $0x60] sm:$0xff]  ;;  %v1040_v6 = vld [vmem:[%s2666_s4 + $0x68] sm:$0xff] }
 0x108   :  { %v1830_v9 = vpop.f32.mrf.mxu0 }
 0x109   :  { %2035 = vmatprep.mubr.f32.mxu0 %v2514_v8 }
 0x10a   :  { %v1831_v11 = vpop.f32.mrf.mxu0  ;;  %2041 = vmatpush3.xpose.msra.mxu1 %v381_v60 }
 0x10b   :  { %v2517_v12 = vadd.f32 %v1831_v11, %v1830_v9  ;;  %2052 = vmatprep.subr.mxu1 %v2002_v10  ;;  %v1041_v11 = vld [vmem:[%s2666_s4 + $0x70] sm:$0xff] }
 0x10c   :  { %v1833_v13 = vpop.f32.mrf.mxu0 }
 0x10d   :  { %2036 = vmatmul.mubr.f32.vlgmr.msra.gmra.mxu0 %v2517_v12 }
 0x10e   :  { %2046 = vmatpush3.xpose.msra.mxu0 %v1999_v63  ;;  %v1834_v14 = vpop.f32.mrf.mxu0  ;;  %v1037_v63 = vld [vmem:[%s2666_s4 + $0x50] sm:$0xff] }
 0x10f   :  { %v2520_v15 = vadd.f32 %v1834_v14, %v1833_v13  ;;  %2047 = vmatprep.subr.mxu0 %v391_v7 }
 0x110   :  { %v1836_v16 = vpop.f32.mrf.mxu0 }
 0x111   :  { %2042 = vmatprep.mubr.f32.mxu1 %v2520_v15 }
 0x112   :  { %2048 = vmatpush3.xpose.msra.mxu0 %v391_v7  ;;  %v1837_v17 = vpop.f32.mrf.mxu0 }
 0x113   :  { %v2523_v18 = vadd.f32 %v1837_v17, %v1836_v16  ;;  %2059 = vmatprep.subr.mxu0 %v2493_v41 }
 0x114   :  { %v1839_v19 = vpop.f32.mrf.mxu0 }
 0x115   :  { %2043 = vmatmul.mubr.f32.vlgmr.msra.gmra.mxu1 %v2523_v18 }
 0x116   :  { %2053 = vmatpush3.xpose.msra.mxu1 %v2002_v10  ;;  %v1840_v21 = vpop.f32.mrf.mxu0 }
 0x117   :  { %v2527_v22 = vadd.f32 %v1840_v21, %v1839_v19  ;;  %2054 = vmatprep.subr.mxu1 %v401_v20 }
 0x118   :  { %v1842_v23 = vpop.f32.mrf.mxu0 }
 0x119   :  { %2049 = vmatprep.mubr.f32.mxu0 %v2527_v22 }
 0x11a   :  { %2055 = vmatpush3.xpose.msra.mxu1 %v401_v20  ;;  %v1843_v24 = vpop.f32.mrf.mxu0 }
 0x11b   :  { %v2530_v25 = vadd.f32 %v1843_v24, %v1842_v23  ;;  %2066 = vmatprep.subr.mxu1 %v2499_v51 }
 0x11c   :  { %v1845_v26 = vpop.f32.mrf.mxu0 }
 0x11d   :  { %2050 = vmatmul.mubr.f32.vlgmr.msra.gmra.mxu0 %v2530_v25 }
 0x11e   :  { %2060 = vmatpush3.msra.mxu0 %v2493_v41  ;;  %v1846_v27 = vpop.f32.mrf.mxu0 }
 0x11f   :  { %v2535_v28 = vadd.f32 %v1846_v27, %v1845_v26  ;;  %2061 = vmatprep.subr.mxu0 %v2490_v36 }
 0x120   :  { %2062 = vmatpush3.msra.mxu0 %v2490_v36  ;;  %v1848_v29 = vpop.f32.mrf.mxu0 }
 0x121   :  { %2073 = vmatprep.subr.mxu0 %v2505_v61  ;;  %2056 = vmatprep.mubr.f32.mxu1 %v2535_v28 }
 0x122   :  { %v1849_v30 = vpop.f32.mrf.mxu0 }
 0x123   :  { %v2541_v31 = vadd.f32 %v1849_v30, %v1848_v29 }
 0x125   :  { %2057 = vmatmul.mubr.f32.vlgmr.msra.gmra.mxu1 %v2541_v31 }
 0x126   :  { %2067 = vmatpush3.msra.mxu1 %v2499_v51  ;;  %v1033_v51 = vld [vmem:[%s2666_s4 + $0x30] sm:$0xff] }
 0x127   :  { %2068 = vmatprep.subr.mxu1 %v2496_v46 }
 0x128   :  { %2069 = vmatpush3.msra.mxu1 %v2496_v46  ;;  %v1032_v46 = vld [vmem:[%s2666_s4 + $0x28] sm:$0xff] }
 0x129   :  { %2080 = vmatprep.subr.mxu1 %v2511_v4 }
 0x1ad   :  { %v2009_v32 = vpop.f32.mrf.mxu1 }
 0x1ae   :  { %1012 = vst.msk [vmem:[#allocation2 + $0x8] sm:$0xff] %vm1010_vm0, %v2009_v32  ;;  %v1044_v37 = vmul.f32 %v2009_v32, %v1028_v34 }
 0x1af   :  { %v476_v35 = vpop.f32.mrf.mxu1 }
 0x1b0   :  { %1011 = vst.msk [vmem:[#allocation2] sm:$0xff] %vm1010_vm0, %v476_v35  ;;  %v1043_v36 = vmul.f32 %v1027_v33, %v476_v35 }
 0x1b2   :  { %2063 = vmatprep.mubr.msk.f32.mxu0 %vm1010_vm0, %v1043_v36 }
 0x1b3   :  { %2064 = vmatmul.mubr.msk.f32.vlgmr.msra.gmra.mxu0 %vm1010_vm0, %v1044_v37 }
 0x1b4   :  { %2074 = vmatpush3.msra.mxu0 %v2505_v61 }
 0x1b5   :  { %2075 = vmatprep.subr.mxu0 %v2502_v56  ;;  %v2016_v38 = vpop.f32.mrf.mxu1 }
 0x1b6   :  { %1014 = vst.msk [vmem:[#allocation2 + $0x18] sm:$0xff] %vm1010_vm0, %v2016_v38  ;;  %2076 = vmatpush3.msra.mxu0 %v2502_v56  ;;  %v1046_v43 = vmul.f32 %v2016_v38, %v1030_v40 }
 0x1b7   :  { %2087 = vmatprep.subr.mxu0 %v2517_v12  ;;  %v551_v41 = vpop.f32.mrf.mxu1 }
 0x1b8   :  { %1013 = vst.msk [vmem:[#allocation2 + $0x10] sm:$0xff] %vm1010_vm0, %v551_v41  ;;  %v1045_v42 = vmul.f32 %v1029_v39, %v551_v41 }
 0x1ba   :  { %2070 = vmatprep.mubr.msk.f32.mxu1 %vm1010_vm0, %v1045_v42 }
 0x1bb   :  { %2071 = vmatmul.mubr.msk.f32.vlgmr.msra.gmra.mxu1 %vm1010_vm0, %v1046_v43 }
 0x1bc   :  { %2081 = vmatpush3.msra.mxu1 %v2511_v4 }
 0x1bd   :  { %2082 = vmatprep.subr.mxu1 %v2508_v1  ;;  %v2023_v44 = vpop.f32.mrf.mxu1 }
 0x1be   :  { %1016 = vst.msk [vmem:[#allocation2 + $0x28] sm:$0xff] %vm1010_vm0, %v2023_v44  ;;  %2083 = vmatpush3.msra.mxu1 %v2508_v1  ;;  %v1048_v49 = vmul.f32 %v2023_v44, %v1032_v46 }
 0x1bf   :  { %2094 = vmatprep.subr.mxu1 %v2523_v18  ;;  %v626_v47 = vpop.f32.mrf.mxu1 }
 0x1c0   :  { %1015 = vst.msk [vmem:[#allocation2 + $0x20] sm:$0xff] %vm1010_vm0, %v626_v47  ;;  %v1047_v48 = vmul.f32 %v1031_v45, %v626_v47 }
 0x1c2   :  { %2077 = vmatprep.mubr.msk.f32.mxu0 %vm1010_vm0, %v1047_v48 }
 0x1c3   :  { %2078 = vmatmul.mubr.msk.f32.vlgmr.msra.gmra.mxu0 %vm1010_vm0, %v1048_v49 }
 0x1c4   :  { %2088 = vmatpush3.msra.mxu0 %v2517_v12  ;;  %v1042_v12 = vld [vmem:[%s2666_s4 + $0x78] sm:$0xff] }
 0x1c5   :  { %2089 = vmatprep.subr.mxu0 %v2514_v8  ;;  %v2030_v50 = vpop.f32.mrf.mxu1 }
 0x1c6   :  { %1018 = vst.msk [vmem:[#allocation2 + $0x38] sm:$0xff] %vm1010_vm0, %v2030_v50  ;;  %2090 = vmatpush3.msra.mxu0 %v2514_v8  ;;  %v1050_v55 = vmul.f32 %v2030_v50, %v1034_v52 }
 0x1c7   :  { %2101 = vmatprep.subr.mxu0 %v2530_v25  ;;  %v701_v53 = vpop.f32.mrf.mxu1 }
 0x1c8   :  { %1017 = vst.msk [vmem:[#allocation2 + $0x30] sm:$0xff] %vm1010_vm0, %v701_v53  ;;  %v1049_v54 = vmul.f32 %v1033_v51, %v701_v53 }
 0x1ca   :  { %2084 = vmatprep.mubr.msk.f32.mxu1 %vm1010_vm0, %v1049_v54 }
 0x1cb   :  { %2085 = vmatmul.mubr.msk.f32.vlgmr.msra.gmra.mxu1 %vm1010_vm0, %v1050_v55 }
 0x1cc   :  { %2095 = vmatpush3.msra.mxu1 %v2523_v18 }
 0x1cd   :  { %2096 = vmatprep.subr.mxu1 %v2520_v15  ;;  %v2037_v56 = vpop.f32.mrf.mxu0 }
 0x1ce   :  { %1020 = vst.msk [vmem:[#allocation2 + $0x48] sm:$0xff] %vm1010_vm0, %v2037_v56  ;;  %2097 = vmatpush3.msra.mxu1 %v2520_v15  ;;  %v1052_v61 = vmul.f32 %v2037_v56, %v1036_v58 }
 0x1cf   :  { %2108 = vmatprep.subr.mxu1 %v2541_v31  ;;  %v776_v59 = vpop.f32.mrf.mxu0 }
 0x1d0   :  { %1019 = vst.msk [vmem:[#allocation2 + $0x40] sm:$0xff] %vm1010_vm0, %v776_v59  ;;  %v1051_v60 = vmul.f32 %v1035_v57, %v776_v59 }
 0x1d2   :  { %2091 = vmatprep.mubr.msk.f32.mxu0 %vm1010_vm0, %v1051_v60 }
 0x1d3   :  { %2092 = vmatmul.mubr.msk.f32.vlgmr.msra.gmra.mxu0 %vm1010_vm0, %v1052_v61 }
 0x1d4   :  { %2102 = vmatpush3.msra.mxu0 %v2530_v25 }
 0x1d5   :  { %2103 = vmatprep.subr.mxu0 %v2527_v22  ;;  %v2044_v62 = vpop.f32.mrf.mxu1 }
 0x1d6   :  { %1022 = vst.msk [vmem:[#allocation2 + $0x58] sm:$0xff] %vm1010_vm0, %v2044_v62  ;;  %2104 = vmatpush3.msra.mxu0 %v2527_v22  ;;  %v1054_v3 = vmul.f32 %v2044_v62, %v1038_v0 }
 0x1d7   :  { %v851_v1 = vpop.f32.mrf.mxu1 }
 0x1d8   :  { %1021 = vst.msk [vmem:[#allocation2 + $0x50] sm:$0xff] %vm1010_vm0, %v851_v1  ;;  %v1053_v2 = vmul.f32 %v1037_v63, %v851_v1 }
 0x1da   :  { %2098 = vmatprep.mubr.msk.f32.mxu1 %vm1010_vm0, %v1053_v2 }
 0x1db   :  { %2099 = vmatmul.mubr.msk.f32.vlgmr.msra.gmra.mxu1 %vm1010_vm0, %v1054_v3 }
 0x1dc   :  { %2109 = vmatpush3.msra.mxu1 %v2541_v31 }
 0x1dd   :  { %2110 = vmatprep.subr.mxu1 %v2535_v28  ;;  %v2051_v4 = vpop.f32.mrf.mxu0 }
 0x1de   :  { %2111 = vmatpush3.msra.mxu1 %v2535_v28  ;;  %1024 = vst.msk [vmem:[#allocation2 + $0x68] sm:$0xff] %vm1010_vm0, %v2051_v4  ;;  %v1056_v9 = vmul.f32 %v2051_v4, %v1040_v6 }
 0x1df   :  { %v926_v7 = vpop.f32.mrf.mxu0 }
 0x1e0   :  { %1023 = vst.msk [vmem:[#allocation2 + $0x60] sm:$0xff] %vm1010_vm0, %v926_v7  ;;  %v1055_v8 = vmul.f32 %v1039_v5, %v926_v7 }
 0x1e2   :  { %2105 = vmatprep.mubr.msk.f32.mxu0 %vm1010_vm0, %v1055_v8 }
 0x1e3   :  { %2106 = vmatmul.mubr.msk.f32.vlgmr.msra.gmra.mxu0 %vm1010_vm0, %v1056_v9 }
 0x1e5   :  { %v2058_v10 = vpop.f32.mrf.mxu1 }
 0x1e6   :  { %1026 = vst.msk [vmem:[#allocation2 + $0x78] sm:$0xff] %vm1010_vm0, %v2058_v10  ;;  %v1058_v15 = vmul.f32 %v2058_v10, %v1042_v12 }
 0x1e7   :  { %v1001_v13 = vpop.f32.mrf.mxu1 }
 0x1e8   :  { %1025 = vst.msk [vmem:[#allocation2 + $0x70] sm:$0xff] %vm1010_vm0, %v1001_v13  ;;  %v1057_v14 = vmul.f32 %v1041_v11, %v1001_v13 }
 0x1ea   :  { %2112 = vmatprep.mubr.msk.f32.mxu1 %vm1010_vm0, %v1057_v14 }
 0x1eb   :  { %2113 = vmatmul.mubr.msk.f32.vlgmr.msra.gmra.mxu1 %vm1010_vm0, %v1058_v15 }
 0x1ec   :  { %2130 = shalt.err (!%p2127_p4)
}
 0x1ed   :  { %s2164_s4 = smov 128   ;;  %s2165_s17 = smov 8  }
 0x1ee   :  { %1734 = dma.vmem_to_hbm [thread:$0]  %s1729_s15, 2048, %s2667_s5, [#allocation3], %s2164_s4, %s2164_s4, %s2165_s17  }
 0x1ef   :  { %s2166_s5 = smov [#allocation4]  }
 0x1f0   :  { %s1740_s20 = sshll.u32 %s2166_s5, 4  ;;  %s1741_s20 = int_to_ptr.vmem [resolvable:$true] %s1740_s20 }
 0x1f1   :  { %s2139_s21 = scalar_lea.vmem %s1741_s20, 2048  ;;  %p2144_p6 = scmp.lt.s32.totalorder %s1741_s20, %s1741_s20 }
 0x1f2   :  { %p2140_p5 = scmp.ne.s32.totalorder %s1741_s20, %s2139_s21  ;;  %p2145_p7 = scmp.lt.s32.totalorder %s2139_s21, %s2139_s21 }
 0x1f4   :  { %p2146_p8 = por %p2145_p7, %p2144_p6 }
 0x1f6   :  { %p2147_p9 = pnand %p2146_p8, %p2140_p5 }
 0x273   :  { %v2065_v16 = vpop.f32.mrf.mxu0 }
 0x274   :  { %1708 = vst [vmem:[#allocation4 + $0x8] sm:$0xff] %v2065_v16 }
 0x275   :  { %v1131_v17 = vpop.f32.mrf.mxu0 }
 0x276   :  { %1707 = vst [vmem:[#allocation4] sm:$0xff] %v1131_v17 }
 0x27b   :  { %v2072_v18 = vpop.f32.mrf.mxu1 }
 0x27c   :  { %1710 = vst [vmem:[#allocation4 + $0x18] sm:$0xff] %v2072_v18 }
 0x27d   :  { %v1212_v19 = vpop.f32.mrf.mxu1 }
 0x27e   :  { %1709 = vst [vmem:[#allocation4 + $0x10] sm:$0xff] %v1212_v19 }
 0x283   :  { %v2079_v20 = vpop.f32.mrf.mxu0 }
 0x284   :  { %1712 = vst [vmem:[#allocation4 + $0x28] sm:$0xff] %v2079_v20 }
 0x285   :  { %v1293_v21 = vpop.f32.mrf.mxu0 }
 0x286   :  { %1711 = vst [vmem:[#allocation4 + $0x20] sm:$0xff] %v1293_v21 }
 0x28b   :  { %v2086_v22 = vpop.f32.mrf.mxu1 }
 0x28c   :  { %1714 = vst [vmem:[#allocation4 + $0x38] sm:$0xff] %v2086_v22 }
 0x28d   :  { %v1374_v23 = vpop.f32.mrf.mxu1 }
 0x28e   :  { %1713 = vst [vmem:[#allocation4 + $0x30] sm:$0xff] %v1374_v23 }
 0x293   :  { %v2093_v24 = vpop.f32.mrf.mxu0 }
 0x294   :  { %1716 = vst [vmem:[#allocation4 + $0x48] sm:$0xff] %v2093_v24 }
 0x295   :  { %v1455_v25 = vpop.f32.mrf.mxu0 }
 0x296   :  { %1715 = vst [vmem:[#allocation4 + $0x40] sm:$0xff] %v1455_v25 }
 0x29b   :  { %v2100_v26 = vpop.f32.mrf.mxu1 }
 0x29c   :  { %1718 = vst [vmem:[#allocation4 + $0x58] sm:$0xff] %v2100_v26 }
 0x29d   :  { %v1536_v27 = vpop.f32.mrf.mxu1 }
 0x29e   :  { %1717 = vst [vmem:[#allocation4 + $0x50] sm:$0xff] %v1536_v27 }
 0x2a3   :  { %v2107_v28 = vpop.f32.mrf.mxu0 }
 0x2a4   :  { %1720 = vst [vmem:[#allocation4 + $0x68] sm:$0xff] %v2107_v28 }
 0x2a5   :  { %v1617_v29 = vpop.f32.mrf.mxu0 }
 0x2a6   :  { %1719 = vst [vmem:[#allocation4 + $0x60] sm:$0xff] %v1617_v29 }
 0x2ab   :  { %v2114_v30 = vpop.f32.mrf.mxu1 }
 0x2ac   :  { %1722 = vst [vmem:[#allocation4 + $0x78] sm:$0xff] %v2114_v30 }
 0x2ad   :  { %v1698_v31 = vpop.f32.mrf.mxu1 }
 0x2ae   :  { %1721 = vst [vmem:[#allocation4 + $0x70] sm:$0xff] %v1698_v31 }
 0x2af   :  { %2150 = shalt.err (!%p2147_p9)
}
 0x2b0   :  { %1746 = dma.vmem_to_hbm [thread:$0]  %s1741_s20, 2048, %s2668_s6, [#allocation5], %s2164_s4, %s2164_s4, %s2165_s17  }
 0x2b1   :  { %2159 = dma.done.wait [#allocation3], 2048  }
 0x2b2   :  { %2160 = vsyncadd [#allocation3], 4294965248 }
 0x2b3   :  { %2161 = dma.done.wait [#allocation5], 2048  }
 0x2b4   :  { %2162 = vsyncadd [#allocation5], 4294965248 }
 0x2b5   :  { %1753 = vsyncpa [#allocation3], 1 }
 0x2b6   :  { %1754 = vsyncpa [#allocation5], 1 }

</bundles_post_ra>
